<compile_context>
chip_gen: v7x
topology: tpu7x:2x2x1
jax: 0.10.0
libtpu: 0.0.40
codegen_flags: <defaults>
</compile_context>

<pallas_src>
import functools

import jax
import jax.numpy as jnp
from jax.experimental import pallas as pl
from jax.experimental.pallas import tpu as pltpu


# --------------------------------------------------------------------------- #
# Kernel                                                                      #
# --------------------------------------------------------------------------- #
def _mlp_kernel(x_ref, w1_ref, b1_ref, w2_ref, b2_ref, o_ref):
    # x arrives raw (float, unpadded feature dim).  Cast to bf16 right before
    # the MXU dot; accumulate in f32.  K = In (e.g. 11) is not tile-aligned --
    # Mosaic masks the short contraction internally.
    x = x_ref[...].astype(jnp.bfloat16)
    h = jnp.dot(x, w1_ref[...], preferred_element_type=jnp.float32) + b1_ref[...]
    h = jnp.maximum(h, 0.0)                  # bias-add / ReLU in f32 (v5e-safe)
    o = jnp.dot(h.astype(jnp.bfloat16), w2_ref[...],
                preferred_element_type=jnp.float32) + b2_ref[...]
    o_ref[...] = o.astype(o_ref.dtype)


# --------------------------------------------------------------------------- #
# Helpers                                                                     #
# --------------------------------------------------------------------------- #
def _round_up(n, m):
    return ((n + m - 1) // m) * m


def _pad_to(x, shape):
    pads = [(0, s - d) for d, s in zip(x.shape, shape)]
    return jnp.pad(x, pads)


# A single block (grid-less) handles batches into the thousands for this
# problem size; only tile beyond this.
_SINGLE_BLOCK_MAX = 1024


# --------------------------------------------------------------------------- #
# One-time parameter preprocessing (hoisted out of the forward path)          #
# --------------------------------------------------------------------------- #
def prepare_params(w1, b1, w2, b2):
    """Transpose, pad and cast PyTorch-convention weights ONCE.

    w1: [Hidden, In], b1: [Hidden], w2: [Out, Hidden], b2: [Out]
    Returns kernel-ready operands:
      w1_p: [In, Hp]  bf16   (contraction dim left UNPADDED)
      b1_p: [1,  Hp]  f32
      w2_p: [Hp, Op]  bf16
      b2_p: [1,  Op]  f32
    Zero padding is exact: padded hidden units get bias 0 -> relu(0)=0 and
    padded output columns are zero; both are sliced off / contribute nothing.
    """
    Hidden, In = w1.shape
    Out = w2.shape[0]
    Hp = _round_up(Hidden, 128)   # lane dim of h / K dim of 2nd matmul
    Op = _round_up(Out, 128)      # lane-dense output

    w1_p = _pad_to(w1.T.astype(jnp.float32), (In, Hp)).astype(jnp.bfloat16)
    b1_p = _pad_to(b1.astype(jnp.float32)[None, :], (1, Hp))
    w2_p = _pad_to(w2.T.astype(jnp.float32), (Hp, Op)).astype(jnp.bfloat16)
    b2_p = _pad_to(b2.astype(jnp.float32)[None, :], (1, Op))

    # Materialize now so transpose/pad/cast never re-runs per forward call.
    return jax.tree_util.tree_map(jax.block_until_ready,
                                  (w1_p, b1_p, w2_p, b2_p))


# --------------------------------------------------------------------------- #
# Forward                                                                     #
# --------------------------------------------------------------------------- #
@functools.partial(jax.jit, static_argnames=("out_features",))
def linear_qnet_forward(x, w1_p, b1_p, w2_p, b2_p, *, out_features):
    """relu(x @ W1 + b1) @ W2 + b2, with pre-processed (padded, bf16) weights.

    x: [B, In] float (passed raw -- no wrapper pad/cast).
    """
    B, In = x.shape
    assert w1_p.shape[0] == In, "prepare_params was built for a different In"
    Hp = w1_p.shape[1]
    Op = w2_p.shape[1]

    if B <= _SINGLE_BLOCK_MAX:
        # Small/medium batch: single block, grid-less (no per-step overhead).
        # All operands are whole-array VMEM residents; block == full array so
        # the non-tile-aligned shapes ([B, 11], [11, 128]) are legal.
        vmem = pl.BlockSpec(memory_space=pltpu.MemorySpace.VMEM)
        out_p = pl.pallas_call(
            _mlp_kernel,
            out_shape=jax.ShapeDtypeStruct((B, Op), jnp.float32),
            in_specs=[vmem, vmem, vmem, vmem, vmem],
            out_specs=vmem,
        )(x, w1_p, b1_p, w2_p, b2_p)
    else:
        # Large batch: tile the batch axis.  No batch padding in the wrapper:
        # grid = cdiv(B, tile); Pallas handles the ragged last block and drops
        # out-of-bounds output rows.  Pick an EVEN number of near-equal tiles
        # so v7x's two TensorCores ("parallel") both get real rows.
        num_tiles = pl.cdiv(B, _SINGLE_BLOCK_MAX)
        num_tiles = 2 * ((num_tiles + 1) // 2)          # round up to even
        tile = _round_up(pl.cdiv(B, num_tiles), 16)     # 16: bf16 sublane pack
        grid = (pl.cdiv(B, tile),)

        out_p = pl.pallas_call(
            _mlp_kernel,
            out_shape=jax.ShapeDtypeStruct((B, Op), jnp.float32),
            grid=grid,
            in_specs=[
                pl.BlockSpec((tile, In), lambda i: (i, 0)),   # x: batch-tiled
                pl.BlockSpec((In, Hp), lambda i: (0, 0)),     # weights stay
                pl.BlockSpec((1, Hp), lambda i: (0, 0)),      # VMEM-resident
                pl.BlockSpec((Hp, Op), lambda i: (0, 0)),     # across steps
                pl.BlockSpec((1, Op), lambda i: (0, 0)),
            ],
            out_specs=pl.BlockSpec((tile, Op), lambda i: (i, 0)),
            compiler_params=pltpu.CompilerParams(
                dimension_semantics=("parallel",)),
        )(x, w1_p, b1_p, w2_p, b2_p)

    return out_p[:, :out_features]


# --------------------------------------------------------------------------- #
# Param init (mimics PyTorch nn.Linear uniform +/- 1/sqrt(fan_in))            #
# --------------------------------------------------------------------------- #
def init_params(key, input_size, hidden_size, output_size):
    k1, k2, k3, k4 = jax.random.split(key, 4)
    bound1 = 1.0 / jnp.sqrt(input_size)
    bound2 = 1.0 / jnp.sqrt(hidden_size)
    w1 = jax.random.uniform(k1, (hidden_size, input_size), jnp.float32, -bound1, bound1)
    b1 = jax.random.uniform(k2, (hidden_size,), jnp.float32, -bound1, bound1)
    w2 = jax.random.uniform(k3, (output_size, hidden_size), jnp.float32, -bound2, bound2)
    b2 = jax.random.uniform(k4, (output_size,), jnp.float32, -bound2, bound2)
    return w1, b1, w2, b2


# TODO(synk): the PyTorch module's save()/load() (torch file I/O) has no kernel
# equivalent and is intentionally not translated.

if __name__ == "__main__":
    # Snake-game Q-net shapes: 11 features -> 32 hidden -> 3 actions.
    input_size, hidden_size, output_size = 11, 32, 3

    key = jax.random.PRNGKey(0)
    kx, kx2, kp = jax.random.split(key, 3)
    w1, b1, w2, b2 = init_params(kp, input_size, hidden_size, output_size)

    # One-time weight preprocessing (hoisted out of the per-call forward path).
    w1_p, b1_p, w2_p, b2_p = prepare_params(w1, b1, w2, b2)

    def ref(x):
        return jnp.maximum(x @ w1.T + b1, 0.0) @ w2.T + b2

    # --- small-batch (grid-less) inference path; x passed raw, no wrapper ops ---
    x_small = jax.random.normal(kx, (4, input_size), jnp.float32)
    out_small = jax.block_until_ready(linear_qnet_forward(
        x_small, w1_p, b1_p, w2_p, b2_p, out_features=output_size))
    assert out_small.shape == (4, output_size)
    # bf16 matmul operands -> loosened tolerance vs. the f32 reference.
    assert jnp.allclose(out_small, ref(x_small), atol=5e-2, rtol=5e-2)

    # --- batch-tiled path (B > 1024): even 2-way split, ragged last block ---
    x_big = jax.random.normal(kx2, (1200, input_size), jnp.float32)
    out_big = jax.block_until_ready(linear_qnet_forward(
        x_big, w1_p, b1_p, w2_p, b2_p, out_features=output_size))
    assert out_big.shape == (1200, output_size)
    assert jnp.allclose(out_big, ref(x_big), atol=5e-2, rtol=5e-2)

    print("KERNEL_OK")
</pallas_src>

<mosaic_0001>
module attributes {stable_mosaic.version = 11 : i64} {
  func.func @_mlp_kernel(%arg0: memref<4x11xf32, #tpu.memory_space<vmem>>, %arg1: memref<11x128xbf16, #tpu.memory_space<vmem>>, %arg2: memref<1x128xf32, #tpu.memory_space<vmem>>, %arg3: memref<128x128xbf16, #tpu.memory_space<vmem>>, %arg4: memref<1x128xf32, #tpu.memory_space<vmem>>, %arg5: memref<4x128xf32, #tpu.memory_space<vmem>>) attributes {dimension_semantics = [], scalar_prefetch = 0 : i64, scratch_operands = 0 : i64, tpu.core_type = #tpu.core_type<tc>} {
    %c0 = arith.constant 0 : index
    %c0_0 = arith.constant 0 : index
    %0 = vector.load %arg0[%c0, %c0_0] : memref<4x11xf32, #tpu.memory_space<vmem>>, vector<4x11xf32>
    %1 = arith.truncf %0 : vector<4x11xf32> to vector<4x11xbf16>
    %c0_1 = arith.constant 0 : index
    %c0_2 = arith.constant 0 : index
    %2 = vector.load %arg1[%c0_1, %c0_2] : memref<11x128xbf16, #tpu.memory_space<vmem>>, vector<11x128xbf16>
    %cst = arith.constant dense<0.000000e+00> : vector<4x128xf32>
    %3 = tpu.matmul %1, %2, %cst {dimension_numbers = #tpu.dot_dimension_numbers<[1], [0], [0], [1], [0, 0, 1, 1], [], []>} : vector<4x11xbf16>, vector<11x128xbf16>, vector<4x128xf32> -> vector<4x128xf32>
    %c0_3 = arith.constant 0 : index
    %c0_4 = arith.constant 0 : index
    %4 = vector.load %arg2[%c0_3, %c0_4] : memref<1x128xf32, #tpu.memory_space<vmem>>, vector<1x128xf32>
    %5 = vector.broadcast %4 : vector<1x128xf32> to vector<4x128xf32>
    %6 = arith.addf %3, %5 : vector<4x128xf32>
    %cst_5 = arith.constant 0.000000e+00 : f32
    %7 = vector.broadcast %cst_5 : f32 to vector<4x128xf32>
    %8 = arith.maximumf %6, %7 : vector<4x128xf32>
    %9 = arith.truncf %8 : vector<4x128xf32> to vector<4x128xbf16>
    %c0_6 = arith.constant 0 : index
    %c0_7 = arith.constant 0 : index
    %10 = vector.load %arg3[%c0_6, %c0_7] : memref<128x128xbf16, #tpu.memory_space<vmem>>, vector<128x128xbf16>
    %cst_8 = arith.constant dense<0.000000e+00> : vector<4x128xf32>
    %11 = tpu.matmul %9, %10, %cst_8 {dimension_numbers = #tpu.dot_dimension_numbers<[1], [0], [0], [1], [0, 0, 1, 1], [], []>} : vector<4x128xbf16>, vector<128x128xbf16>, vector<4x128xf32> -> vector<4x128xf32>
    %c0_9 = arith.constant 0 : index
    %c0_10 = arith.constant 0 : index
    %12 = vector.load %arg4[%c0_9, %c0_10] : memref<1x128xf32, #tpu.memory_space<vmem>>, vector<1x128xf32>
    %13 = vector.broadcast %12 : vector<1x128xf32> to vector<4x128xf32>
    %14 = arith.addf %11, %13 : vector<4x128xf32>
    %c0_11 = arith.constant 0 : index
    %c0_12 = arith.constant 0 : index
    %15 = vector.load %arg5[%c0_11, %c0_12] : memref<4x128xf32, #tpu.memory_space<vmem>>, vector<4x128xf32>
    tpu.vector_store %arg5[%c0_11, %c0_12], %14 {strides = array<i32>} : memref<4x128xf32, #tpu.memory_space<vmem>>, vector<4x128xf32>,
    return
  }
}

</mosaic_0001>

<bundles_post_ra>
// kernel: linear_qnet_forward.1
= control target key start
LH: loop header
LB: loop body
LE: loop exit
PB: predicated region body
PF: predicated region fallthrough
CT: control target
= control target key end

     0   :  { %10 = vsyncpa [#allocation3], 0  ;;  %s518_s0 = inlined_call_operand.hbm [shape: f32[4,11], index: 0, kind: input, shape index: {}]   ;;  %s519_s1 = inlined_call_operand.hbm [shape: bf16[11,128], index: 1, kind: input, shape index: {}]   ;;  %s520_s2 = inlined_call_operand.vmem [shape: f32[1,128], index: 2, kind: input, shape index: {}]   ;;  %s521_s3 = inlined_call_operand.hbm [shape: bf16[128,128], index: 3, kind: input, shape index: {}]   ;;  %s522_s4 = inlined_call_operand.vmem [shape: f32[1,128], index: 4, kind: input, shape index: {}]   ;;  %s523_s5 = inlined_call_operand.hbm [shape: f32[4,128], index: 5, kind: output, shape index: {}]  }
   0x1   :  { %11 = vsyncpa [#allocation6], 0 }
   0x2   :  { %12 = vsyncpa [#allocation4], 0  ;;  %s419_s18 = smov [#allocation5]   ;;  %s325_s22 = scalar_lea.hbm %s519_s1, 128 }
   0x3   :  { %s28_s19 = sshll.u32 %s419_s18, 4  ;;  %p326_p0 = scmp.ne.s32.totalorder %s519_s1, %s325_s22  ;;  %s29_s19 = int_to_ptr.vmem [resolvable:$true] %s28_s19 }
   0x4   :  { %p329_p1 = scmp.lt.u32.totalorder %s325_s22, %s519_s1 }
   0x6   :  { %p331_p2 = pnand %p329_p1, %p326_p0 }
   0x8   :  { %334 = shalt.err (!%p331_p2)
}
   0x9   :  { %s335_s27 = scalar_lea.vmem %s29_s19, 128  ;;  %p340_p4 = scmp.lt.s32.totalorder %s29_s19, %s29_s19 }
   0xa   :  { %p336_p3 = scmp.ne.s32.totalorder %s29_s19, %s335_s27  ;;  %p341_p5 = scmp.lt.s32.totalorder %s335_s27, %s335_s27 }
   0xc   :  { %p342_p6 = por %p341_p5, %p340_p4 }
   0xe   :  { %p343_p7 = pnand %p342_p6, %p336_p3 }
  0x10   :  { %346 = shalt.err (!%p343_p7)
}
  0x11   :  { %s420_s28 = smov 64   ;;  %s421_s29 = smov 4  }
  0x12   :  { %34 = dma.hbm_to_vmem [thread:$0]  %s519_s1, 128, %s29_s19, [#allocation6], %s420_s28, %s420_s28, %s421_s29  }
  0x13   :  { %s422_s7 = smov [#allocation2]   ;;  %s423_s9 = smov [#allocation7]  }
  0x14   :  { %s19_s8 = sshll.u32 %s422_s7, 4  ;;  %s42_s10 = sshll.u32 %s423_s9, 4  ;;  %s20_s8 = int_to_ptr.vmem [resolvable:$true] %s19_s8  ;;  %s43_s10 = int_to_ptr.vmem [resolvable:$true] %s42_s10 }
  0x15   :  { %s347_s13 = scalar_lea.hbm %s518_s0, 64 }
  0x16   :  { %p348_p8 = scmp.ne.s32.totalorder %s518_s0, %s347_s13  ;;  %p351_p9 = scmp.lt.u32.totalorder %s347_s13, %s518_s0 }
  0x18   :  { %p353_p10 = pnand %p351_p9, %p348_p8 }
  0x1a   :  { %356 = shalt.err (!%p353_p10)
}
  0x1b   :  { %s357_s1 = scalar_lea.vmem %s20_s8, 64  ;;  %p362_p12 = scmp.lt.s32.totalorder %s20_s8, %s20_s8 }
  0x1c   :  { %p358_p11 = scmp.ne.s32.totalorder %s20_s8, %s357_s1  ;;  %p363_p13 = scmp.lt.s32.totalorder %s357_s1, %s357_s1 }
  0x1e   :  { %p364_p0 = por %p363_p13, %p362_p12 }
  0x20   :  { %p365_p1 = pnand %p364_p0, %p358_p11 }
  0x22   :  { %368 = shalt.err (!%p365_p1)
}
  0x23   :  { %22 = dma.hbm_to_vmem [thread:$0]  %s518_s0, 64, %s20_s8, [#allocation3]  }
  0x24   :  { %s369_s22 = scalar_lea.hbm %s521_s3, 1024 }
  0x25   :  { %p370_p2 = scmp.ne.s32.totalorder %s521_s3, %s369_s22  ;;  %p373_p3 = scmp.lt.u32.totalorder %s369_s22, %s521_s3 }
  0x27   :  { %p375_p4 = pnand %p373_p3, %p370_p2 }
  0x29   :  { %378 = shalt.err (!%p375_p4)
}
  0x2a   :  { %s379_s27 = scalar_lea.vmem %s43_s10, 1024  ;;  %p384_p6 = scmp.lt.s32.totalorder %s43_s10, %s43_s10 }
  0x2b   :  { %p380_p5 = scmp.ne.s32.totalorder %s43_s10, %s379_s27  ;;  %p385_p7 = scmp.lt.s32.totalorder %s379_s27, %s379_s27 }
  0x2d   :  { %p386_p8 = por %p385_p7, %p384_p6 }
  0x2f   :  { %p387_p9 = pnand %p386_p8, %p380_p5 }
  0x31   :  { %390 = shalt.err (!%p387_p9)
}
  0x32   :  { %48 = dma.hbm_to_vmem [thread:$0]  %s521_s3, 1024, %s43_s10, [#allocation6], %s420_s28, %s420_s28, %s421_s29  }
  0x33   :  { %413 = dma.done.wait [#allocation3], 64  }
  0x34   :  { %414 = vsyncadd [#allocation3], 4294967232 }
  0x35   :  { %415 = dma.done.wait [#allocation6], 1152  }
  0x36   :  { %416 = vsyncadd [#allocation6], 4294966144  ;;  %vm81_vm0 = vcmask 1044480   ;;  %v424_v0 = vmov 0.0   ;;  %vm425_vm1 = vmmov 0   ;;  %vm82_vm2 = vcmask 1045504  }
  0x37   :  { %281 = vmatprep.subr.bf16.mxu0 %v424_v0  ;;  %287 = vmatprep.subr.bf16.mxu1 %v424_v0  ;;  %v426_v1 = vmov 65535   ;;  %v316_v4 = vld [vmem:[#allocation5] sm:$0x3f]   ;;  %v61_v5 = vld [vmem:[#allocation2] sm:$0xf]  ;;  %v317_v7 = vld [vmem:[#allocation7] sm:$0xff]  }
  0x38   :  { %283 = vmatprep.mubr.msk.bf16.mxu0 %vm425_vm1, %v424_v0  ;;  %303 = vmatprep.mubr.msk.bf16.mxu1 %vm425_vm1, %v424_v0  ;;  %v83_v2 = vsel %vm81_vm0, 4294967295, %v426_v1  ;;  %v62_v8 = vpack.c.bf16 %v61_v5, %v61_v5  ;;  %vm77_vm3 = vcmask 89088   ;;  %v318_v9 = vld [vmem:[#allocation7 + $0x8] sm:$0xff]   ;;  %v319_v10 = vld [vmem:[#allocation7 + $0x10] sm:$0xff]   ;;  %v320_v11 = vld [vmem:[#allocation7 + $0x18] sm:$0xff]   ;;  %s427_s7 = smov [#allocation8]  }
  0x39   :  { %v84_v3 = vsel %vm82_vm2, %v83_v2, 0  ;;  %288 = vmatpush3.bf16.msra.mxu1 %v317_v7  ;;  %v321_v12 = vld [vmem:[#allocation7 + $0x20] sm:$0xff]   ;;  %v322_v13 = vld [vmem:[#allocation7 + $0x28] sm:$0xff]   ;;  %v323_v14 = vld [vmem:[#allocation7 + $0x30] sm:$0xff]   ;;  %s248_s8 = sshll.u32 %s427_s7, 4  ;;  %s249_s8 = int_to_ptr.vmem [resolvable:$true] %s248_s8 }
  0x3a   :  { %v86_v6 = vand.u32 %v316_v4, %v84_v3  ;;  %289 = vmatprep.subr.bf16.mxu1 %v424_v0  ;;  %v324_v15 = vld [vmem:[#allocation7 + $0x38] sm:$0xff]   ;;  %v258_v16 = vld [vmem:[%s520_s2] ss:$0 sm:$0xff]  ;;  %s391_s2 = scalar_lea.vmem %s249_s8, 64  ;;  %p396_p11 = scmp.lt.s32.totalorder %s249_s8, %s249_s8 }
  0x3b   :  { %v261_v24 = vld [vmem:[%s522_s4] ss:$0 sm:$0xff]  ;;  %p392_p10 = scmp.ne.s32.totalorder %s249_s8, %s391_s2  ;;  %p397_p12 = scmp.lt.s32.totalorder %s391_s2, %s391_s2 }
  0x3c   :  { %282 = vmatpush3.bf16.msra.mxu0 %v86_v6 }
  0x3d   :  { %290 = vmatpush3.bf16.msra.mxu1 %v318_v9  ;;  %p398_p13 = por %p397_p12, %p396_p11 }
  0x3e   :  { %291 = vmatprep.subr.bf16.mxu1 %v424_v0 }
  0x3f   :  { %284 = vmatmul.mubr.msk.bf16.vlgmr.msra.gmra.mrb[0].mxu0 %vm77_vm3, %v62_v8  ;;  %p399_p0 = pnand %p398_p13, %p392_p10 }
  0x41   :  { %292 = vmatpush3.bf16.msra.mxu1 %v319_v10 }
  0x42   :  { %293 = vmatprep.subr.bf16.mxu1 %v424_v0 }
  0x45   :  { %294 = vmatpush3.bf16.msra.mxu1 %v320_v11 }
  0x46   :  { %295 = vmatprep.subr.bf16.mxu1 %v424_v0 }
  0x49   :  { %296 = vmatpush3.bf16.msra.mxu1 %v321_v12 }
  0x4a   :  { %297 = vmatprep.subr.bf16.mxu1 %v424_v0 }
  0x4d   :  { %298 = vmatpush3.bf16.msra.mxu1 %v322_v13 }
  0x4e   :  { %299 = vmatprep.subr.bf16.mxu1 %v424_v0 }
  0x51   :  { %300 = vmatpush3.bf16.msra.mxu1 %v323_v14 }
  0x52   :  { %301 = vmatprep.subr.bf16.mxu1 %v424_v0 }
  0x55   :  { %302 = vmatpush3.bf16.msra.mxu1 %v324_v15 }
 0x112   :  { %v122_v17 = vpop.f32.mrb[0].mxu0 }
 0x113   :  { %v123_v18 = vadd.f32 %v258_v16, %v122_v17  ;;  %v285_v19 = vpop.f32.mrb[1].mxu0 }
 0x114   :  { %v125_v20 = vpop.f32.mrb[2].mxu0 }
 0x115   :  { %v128_v21 = vmax.f32 %v123_v18, 0.0  ;;  %v286_v22 = vpop.f32.mrb[3].mxu0 }
 0x117   :  { %v129_v23 = vpack.c.bf16 %v128_v21, %v128_v21 }
 0x119   :  { %304 = vmatmul.mubr.bf16.vlgmr.msra.gmra.mrb[0].mxu1 %v129_v23 }
 0x1ec   :  { %v235_v25 = vpop.f32.mrb[0].mxu1 }
 0x1ed   :  { %v236_v26 = vadd.f32 %v261_v24, %v235_v25  ;;  %v305_v27 = vpop.f32.mrb[1].mxu1 }
 0x1ee   :  { %v238_v28 = vpop.f32.mrb[2].mxu1 }
 0x1ef   :  { %241 = vst [vmem:[#allocation8] sm:$0xf] %v236_v26  ;;  %v306_v29 = vpop.f32.mrb[3].mxu1 }
 0x1f0   :  { %402 = shalt.err (!%p399_p0)
}
 0x1f1   :  { %s403_s4 = scalar_lea.hbm %s523_s5, 64 }
 0x1f2   :  { %p404_p1 = scmp.ne.s32.totalorder %s523_s5, %s403_s4  ;;  %p407_p2 = scmp.lt.u32.totalorder %s403_s4, %s523_s5 }
 0x1f4   :  { %p409_p3 = pnand %p407_p2, %p404_p1 }
 0x1f6   :  { %412 = shalt.err (!%p409_p3)
}
 0x1f7   :  { %251 = dma.vmem_to_hbm [thread:$0]  %s249_s8, 64, %s523_s5, [#allocation4]  }
 0x1f8   :  { %417 = dma.done.wait [#allocation4], 64  }
 0x1f9   :  { %418 = vsyncadd [#allocation4], 4294967232 }
 0x1fa   :  { %255 = vsyncpa [#allocation3], 1 }
 0x1fb   :  { %256 = vsyncpa [#allocation6], 1 }
 0x1fc   :  { %257 = vsyncpa [#allocation4], 1 }

</bundles_post_ra>
